<compile_context>
chip_gen: v5e
topology: v5e:2x2
jax: 0.10.0
libtpu: 0.0.40
codegen_flags: <defaults>
</compile_context>

<pallas_src>
import jax
import jax.numpy as jnp
from jax.experimental import pallas as pl
from jax.experimental.pallas import tpu as pltpu

# physical constants (match the PyTorch module __init__)
M1, M2, L1, L2, G = 1.0, 1.0, 1.0, 1.0, 9.81

LANE = 128  # lane width of a vreg


def _round_up(x: int, m: int) -> int:
    return (x + m - 1) // m * m


def _make_kernel(controlled: bool):
    def kernel(y_ref, o_ref):
        # y_ref / o_ref blocks are (4, tile_rows, 128); each state variable is
        # a dense (tile_rows, 128) tile.
        th1 = y_ref[0]
        th2 = y_ref[1]
        w1 = y_ref[2]
        w2 = y_ref[3]

        d = th1 - th2
        s = jnp.sin(d)
        c = jnp.cos(d)

        # mass matrix entries (m00, m11, k are compile-time scalars)
        m00 = (M1 + M2) * L1 * L1
        m11 = M2 * L2 * L2
        k = M2 * L1 * L2
        m01 = k * c               # == m10
        sk = k * s                # shared sin term used by ff0 and ff1

        # det = m00*m11 - m01^2 = 1 + sin^2(d) >= 1  (zero-padded lanes are safe)
        det = m00 * m11 - m01 * m01
        inv_det = 1.0 / det       # exact f32 reciprocal (approx version failed accuracy)

        # forcing terms
        ff0 = -sk * (w2 * w2) - ((M1 + M2) * G * L1) * jnp.sin(th1)
        ff1 = sk * (w1 * w1) - (M2 * G * L2) * jnp.sin(th2)

        if controlled:
            ff0 = ff0 + (-0.1 * th1 - 0.01 * w1)
            ff1 = ff1 + (-5.0 * (th2 - th1) - 2.0 * w2)

        # yy = M_inv @ ff  (2x2 * 2x1, unrolled elementwise per batch lane)
        yy0 = (m11 * ff0 - m01 * ff1) * inv_det
        yy1 = (m00 * ff1 - m01 * ff0) * inv_det

        # four dense full-tile stores (no masked vst)
        o_ref[0] = w1
        o_ref[1] = w2
        o_ref[2] = yy0
        o_ref[3] = yy1

    return kernel


def double_pendulum_deriv_state_major(y4, controlled: bool = False, tile_rows: int = 512):
    """State-major dynamics: y4 is (4, B) [theta1, theta2, omega1, omega2] rows.

    Returns (4, B) [omega1, omega2, alpha1, alpha2]. No transposes; only a
    free reshape + (possible) zero-padding of the batch axis.
    """
    y4 = jnp.asarray(y4, jnp.float32)
    B = y4.shape[1]

    rows = -(-B // LANE)                              # ceil(B / 128)
    tr = _round_up(min(tile_rows, _round_up(max(rows, 1), 8)), 8)
    rows_p = _round_up(rows, tr)
    B_p = rows_p * LANE

    if B_p != B:
        y4 = jnp.pad(y4, ((0, 0), (0, B_p - B)))      # zero-pad; det >= 1 so padding is safe
    y3 = y4.reshape(4, rows_p, LANE)

    grid = (rows_p // tr,)
    block = (4, tr, LANE)                             # 4*tr*128*4 B per block (1 MiB at tr=512)

    cost = pl.CostEstimate(
        flops=30 * B_p,
        transcendentals=5 * B_p,                      # sin(th1), sin(th2), sin(d), cos(d), rcp
        bytes_accessed=32 * B_p,                      # 16 B in + 16 B out per element
    )

    out3 = pl.pallas_call(
        _make_kernel(controlled),
        out_shape=jax.ShapeDtypeStruct((4, rows_p, LANE), jnp.float32),
        grid=grid,
        in_specs=[pl.BlockSpec(block, lambda i: (0, i, 0))],
        out_specs=pl.BlockSpec(block, lambda i: (0, i, 0)),
        compiler_params=pltpu.CompilerParams(dimension_semantics=("parallel",)),
        cost_estimate=cost,
    )(y3)

    out4 = out3.reshape(4, B_p)
    if B_p != B:
        out4 = out4[:, :B]
    return out4


def double_pendulum_forward(t, y, controlled: bool = False, tile_rows: int = 512):
    """Pallas equivalent of DoublePendulumSystem(controlled).forward(t, y).

    Args:
      t: unused (dynamics are time-invariant; kept for interface parity).
      y: (B, 4) float32 state [theta1, theta2, omega1, omega2].
    Returns:
      (B, 4) float32 derivative [omega1, omega2, alpha1, alpha2].

    Note: the two transposes below exist only for PyTorch (B, 4) interface
    parity; a bandwidth-sensitive caller (e.g. an ODE integrator) should keep
    the state in (4, B) layout and call double_pendulum_deriv_state_major.
    """
    del t
    y = jnp.asarray(y, jnp.float32)
    out4 = double_pendulum_deriv_state_major(y.T, controlled=controlled, tile_rows=tile_rows)
    return out4.T


def _ref_forward(t, y, controlled: bool = False):
    """Pure-JAX reference mirroring the PyTorch forward."""
    del t
    th1, th2, w1, w2 = y[:, 0], y[:, 1], y[:, 2], y[:, 3]
    c = jnp.cos(th1 - th2)
    s = jnp.sin(th1 - th2)
    m00 = (M1 + M2) * L1 ** 2
    m01 = M2 * L1 * L2 * c
    m11 = M2 * L2 ** 2
    det = m00 * m11 - m01 * m01
    ff0 = -M2 * L1 * L2 * s * w2 ** 2 - (M1 + M2) * G * L1 * jnp.sin(th1)
    ff1 = M2 * L1 * L2 * s * w1 ** 2 - M2 * G * L2 * jnp.sin(th2)
    if controlled:
        ff0 = ff0 + (-0.1 * th1 - 0.01 * w1)
        ff1 = ff1 + (-5.0 * (th2 - th1) - 2.0 * w2)
    yy0 = (m11 * ff0 - m01 * ff1) / det
    yy1 = (-m01 * ff0 + m00 * ff1) / det
    return jnp.stack([w1, w2, yy0, yy1], axis=1)


if __name__ == "__main__":
    key = jax.random.PRNGKey(0)
    t = 0.0

    # small batch, PyTorch-style (B, 4) interface, both controlled modes
    B = 8
    y = jax.random.normal(key, (B, 4), dtype=jnp.float32)

    out = jax.block_until_ready(double_pendulum_forward(t, y, controlled=False))
    ref = _ref_forward(t, y, controlled=False)
    assert out.shape == (B, 4) and out.dtype == jnp.float32
    assert jnp.allclose(out, ref, rtol=1e-4, atol=1e-4), \
        f"max abs err {jnp.max(jnp.abs(out - ref))}"

    out_c = jax.block_until_ready(double_pendulum_forward(t, y, controlled=True))
    ref_c = _ref_forward(t, y, controlled=True)
    assert jnp.allclose(out_c, ref_c, rtol=1e-4, atol=1e-4), \
        f"max abs err {jnp.max(jnp.abs(out_c - ref_c))}"

    # exercise the tiled / multi-step-grid state-major path (grid = (2,))
    B2 = 2048
    y2 = jax.random.normal(jax.random.PRNGKey(1), (B2, 4), dtype=jnp.float32)
    out2 = jax.block_until_ready(
        double_pendulum_deriv_state_major(y2.T, controlled=False, tile_rows=8)
    )
    ref2 = _ref_forward(t, y2, controlled=False).T
    assert out2.shape == (4, B2)
    assert jnp.allclose(out2, ref2, rtol=1e-4, atol=1e-4), \
        f"max abs err {jnp.max(jnp.abs(out2 - ref2))}"

    print("KERNEL_OK")
</pallas_src>

<mosaic_0001>
module attributes {stable_mosaic.version = 11 : i64} {
  func.func @kernel(%arg0: i32, %arg1: memref<4x8x128xf32, #tpu.memory_space<vmem>>, %arg2: memref<4x8x128xf32, #tpu.memory_space<vmem>>) attributes {dimension_semantics = [#tpu.dimension_semantics<parallel>], iteration_bounds = array<i64: 1>, scalar_prefetch = 0 : i64, scratch_operands = 0 : i64, tpu.core_type = #tpu.core_type<tc>, window_params = [{transform_indices = @transform_0, window_bounds = array<i64: 4, 8, 128>}, {transform_indices = @transform_1, window_bounds = array<i64: 4, 8, 128>}]} {
    %c0 = arith.constant 0 : index
    %c0_0 = arith.constant 0 : index
    %c0_1 = arith.constant 0 : index
    %0 = vector.load %arg1[%c0, %c0_0, %c0_1] : memref<4x8x128xf32, #tpu.memory_space<vmem>>, vector<1x8x128xf32>
    %1 = vector.shape_cast %0 : vector<1x8x128xf32> to vector<8x128xf32>
    %c1 = arith.constant 1 : index
    %c0_2 = arith.constant 0 : index
    %c0_3 = arith.constant 0 : index
    %2 = vector.load %arg1[%c1, %c0_2, %c0_3] : memref<4x8x128xf32, #tpu.memory_space<vmem>>, vector<1x8x128xf32>
    %3 = vector.shape_cast %2 : vector<1x8x128xf32> to vector<8x128xf32>
    %c2 = arith.constant 2 : index
    %c0_4 = arith.constant 0 : index
    %c0_5 = arith.constant 0 : index
    %4 = vector.load %arg1[%c2, %c0_4, %c0_5] : memref<4x8x128xf32, #tpu.memory_space<vmem>>, vector<1x8x128xf32>
    %5 = vector.shape_cast %4 : vector<1x8x128xf32> to vector<8x128xf32>
    %c3 = arith.constant 3 : index
    %c0_6 = arith.constant 0 : index
    %c0_7 = arith.constant 0 : index
    %6 = vector.load %arg1[%c3, %c0_6, %c0_7] : memref<4x8x128xf32, #tpu.memory_space<vmem>>, vector<1x8x128xf32>
    %7 = vector.shape_cast %6 : vector<1x8x128xf32> to vector<8x128xf32>
    %8 = arith.subf %1, %3 : vector<8x128xf32>
    %9 = math.sin %8 : vector<8x128xf32>
    %10 = math.cos %8 : vector<8x128xf32>
    %cst = arith.constant 1.000000e+00 : f32
    %11 = vector.broadcast %cst : f32 to vector<8x128xf32>
    %12 = arith.mulf %11, %10 : vector<8x128xf32>
    %cst_8 = arith.constant 1.000000e+00 : f32
    %13 = vector.broadcast %cst_8 : f32 to vector<8x128xf32>
    %14 = arith.mulf %13, %9 : vector<8x128xf32>
    %15 = arith.mulf %12, %12 : vector<8x128xf32>
    %cst_9 = arith.constant 2.000000e+00 : f32
    %16 = vector.broadcast %cst_9 : f32 to vector<8x128xf32>
    %17 = arith.subf %16, %15 : vector<8x128xf32>
    %cst_10 = arith.constant 1.000000e+00 : f32
    %18 = vector.broadcast %cst_10 : f32 to vector<8x128xf32>
    %19 = arith.divf %18, %17 : vector<8x128xf32>
    %cst_11 = arith.constant 0.000000e+00 : f32
    %20 = vector.broadcast %cst_11 : f32 to vector<8x128xf32>
    %21 = arith.subf %20, %14 : vector<8x128xf32>
    %22 = arith.mulf %7, %7 : vector<8x128xf32>
    %23 = arith.mulf %21, %22 : vector<8x128xf32>
    %24 = math.sin %1 : vector<8x128xf32>
    %cst_12 = arith.constant 1.962000e+01 : f32
    %25 = vector.broadcast %cst_12 : f32 to vector<8x128xf32>
    %26 = arith.mulf %25, %24 : vector<8x128xf32>
    %27 = arith.subf %23, %26 : vector<8x128xf32>
    %28 = arith.mulf %5, %5 : vector<8x128xf32>
    %29 = arith.mulf %14, %28 : vector<8x128xf32>
    %30 = math.sin %3 : vector<8x128xf32>
    %cst_13 = arith.constant 9.810000e+00 : f32
    %31 = vector.broadcast %cst_13 : f32 to vector<8x128xf32>
    %32 = arith.mulf %31, %30 : vector<8x128xf32>
    %33 = arith.subf %29, %32 : vector<8x128xf32>
    %cst_14 = arith.constant 1.000000e+00 : f32
    %34 = vector.broadcast %cst_14 : f32 to vector<8x128xf32>
    %35 = arith.mulf %34, %27 : vector<8x128xf32>
    %36 = arith.mulf %12, %33 : vector<8x128xf32>
    %37 = arith.subf %35, %36 : vector<8x128xf32>
    %38 = arith.mulf %37, %19 : vector<8x128xf32>
    %cst_15 = arith.constant 2.000000e+00 : f32
    %39 = vector.broadcast %cst_15 : f32 to vector<8x128xf32>
    %40 = arith.mulf %39, %33 : vector<8x128xf32>
    %41 = arith.mulf %12, %27 : vector<8x128xf32>
    %42 = arith.subf %40, %41 : vector<8x128xf32>
    %43 = arith.mulf %42, %19 : vector<8x128xf32>
    %c0_16 = arith.constant 0 : index
    %c0_17 = arith.constant 0 : index
    %c0_18 = arith.constant 0 : index
    %44 = vector.load %arg2[%c0_16, %c0_17, %c0_18] : memref<4x8x128xf32, #tpu.memory_space<vmem>>, vector<1x8x128xf32>
    %45 = vector.shape_cast %44 : vector<1x8x128xf32> to vector<8x128xf32>
    %46 = vector.shape_cast %5 : vector<8x128xf32> to vector<1x8x128xf32>
    tpu.vector_store %arg2[%c0_16, %c0_17, %c0_18], %46 {strides = array<i32>} : memref<4x8x128xf32, #tpu.memory_space<vmem>>, vector<1x8x128xf32>,
    %c1_19 = arith.constant 1 : index
    %c0_20 = arith.constant 0 : index
    %c0_21 = arith.constant 0 : index
    %47 = vector.load %arg2[%c1_19, %c0_20, %c0_21] : memref<4x8x128xf32, #tpu.memory_space<vmem>>, vector<1x8x128xf32>
    %48 = vector.shape_cast %47 : vector<1x8x128xf32> to vector<8x128xf32>
    %49 = vector.shape_cast %7 : vector<8x128xf32> to vector<1x8x128xf32>
    tpu.vector_store %arg2[%c1_19, %c0_20, %c0_21], %49 {strides = array<i32>} : memref<4x8x128xf32, #tpu.memory_space<vmem>>, vector<1x8x128xf32>,
    %c2_22 = arith.constant 2 : index
    %c0_23 = arith.constant 0 : index
    %c0_24 = arith.constant 0 : index
    %50 = vector.load %arg2[%c2_22, %c0_23, %c0_24] : memref<4x8x128xf32, #tpu.memory_space<vmem>>, vector<1x8x128xf32>
    %51 = vector.shape_cast %50 : vector<1x8x128xf32> to vector<8x128xf32>
    %52 = vector.shape_cast %38 : vector<8x128xf32> to vector<1x8x128xf32>
    tpu.vector_store %arg2[%c2_22, %c0_23, %c0_24], %52 {strides = array<i32>} : memref<4x8x128xf32, #tpu.memory_space<vmem>>, vector<1x8x128xf32>,
    %c3_25 = arith.constant 3 : index
    %c0_26 = arith.constant 0 : index
    %c0_27 = arith.constant 0 : index
    %53 = vector.load %arg2[%c3_25, %c0_26, %c0_27] : memref<4x8x128xf32, #tpu.memory_space<vmem>>, vector<1x8x128xf32>
    %54 = vector.shape_cast %53 : vector<1x8x128xf32> to vector<8x128xf32>
    %55 = vector.shape_cast %43 : vector<8x128xf32> to vector<1x8x128xf32>
    tpu.vector_store %arg2[%c3_25, %c0_26, %c0_27], %55 {strides = array<i32>} : memref<4x8x128xf32, #tpu.memory_space<vmem>>, vector<1x8x128xf32>,
    return
  }
  func.func @transform_0(%arg0: i32) -> (i32, i32, i32) {
    %c0_i32 = arith.constant 0 : i32
    %c0_i32_0 = arith.constant 0 : i32
    %c0_i32_1 = arith.constant 0 : i32
    return %c0_i32, %arg0, %c0_i32_0 : i32, i32, i32
  }
  func.func @transform_1(%arg0: i32) -> (i32, i32, i32) {
    %c0_i32 = arith.constant 0 : i32
    %c0_i32_0 = arith.constant 0 : i32
    %c0_i32_1 = arith.constant 0 : i32
    return %c0_i32, %arg0, %c0_i32_0 : i32, i32, i32
  }
}

</mosaic_0001>

<bundles_post_ra>
// kernel: tpu_custom_call.1
= control target key start
LH: loop header
LB: loop body
LE: loop exit
PB: predicated region body
PF: predicated region fallthrough
CT: control target
= control target key end

     0   :  { %6 = vsyncpa [#allocation3], 0  ;;  %s1184_s0 = inlined_call_operand.hbm [shape: f32[4,8,128], index: 0, kind: input, shape index: {}]   ;;  %s1185_s1 = inlined_call_operand.hbm [shape: f32[4,8,128], index: 1, kind: output, shape index: {}]  }
   0x1   :  { %7 = vsyncpa [#allocation4], 0  ;;  %s12_s8 = sshll.u32 %s1184_s0, 4  ;;  %s788_s9 = smov [#allocation2]   ;;  %s13_s8 = int_to_ptr.hbm [resolvable:$true] %s12_s8 }
   0x2   :  { %s14_s10 = sshll.u32 %s788_s9, 4  ;;  %s789_s11 = smov 128   ;;  %s15_s10 = int_to_ptr.vmem [resolvable:$true] %s14_s10 }
   0x3   :  { %s790_s12 = smov 8  }
   0x4   :  { %20 = dma.hbm_to_vmem [thread:$0]  %s13_s8, 512, %s15_s10, [#allocation3], %s789_s11, %s789_s11, %s790_s12  }
   0x5   :  { %784 = dma.done.wait [#allocation3], 512  }
   0x6   :  { %785 = vsyncadd [#allocation3], 4294966784  ;;  %v815_v0 = vld [vmem:[#allocation2] sm:$0xff]  ;;  %v817_v1 = vld [vmem:[#allocation2 + $0x8] sm:$0xff]  ;;  %v791_v34 = vmov 683565275  }
   0x7   :  { %v819_v2 = vld [vmem:[#allocation2 + $0x10] sm:$0xff]  ;;  %v821_v3 = vld [vmem:[#allocation2 + $0x18] sm:$0xff]  ;;  %v825_v4 = vsub.f32 %v815_v0, %v817_v1  ;;  %v362_v5 = vand.u32 2147483647, %v815_v0  ;;  %v365_v6 = vand.u32 2139095040, %v815_v0  ;;  %v524_v7 = vand.u32 2139095040, %v817_v1 }
   0x8   :  { %685 = vst [vmem:[#allocation5] sm:$0xff] %v819_v2  ;;  %v792_v36 = vmov 2475754826   ;;  %v793_v38 = vmov 2131351028   ;;  %s798_s0 = smov [#allocation5]  }
   0x9   :  { %687 = vst [vmem:[#allocation5 + $0x8] sm:$0xff] %v821_v3  ;;  %v33_v8 = vand.u32 2147483647, %v825_v4  ;;  %v36_v9 = vand.u32 2139095040, %v825_v4  ;;  %v366_v10 = vshrl.u32 %v365_v6, 23  ;;  %v525_v15 = vshrl.u32 %v524_v7, 23 }
   0xa   :  { %v369_v11 = vand.u32 8388607, %v362_v5  ;;  %v794_v40 = vmov 2102212464   ;;  %v795_v42 = vmov 920167782  }
   0xb   :  { %v37_v12 = vshrl.u32 %v36_v9, 23  ;;  %v40_v13 = vand.u32 8388607, %v33_v8  ;;  %v717_v14 = vadd.s32 4294967169, %v366_v10  ;;  %v720_v21 = vadd.s32 4294967169, %v525_v15  ;;  %s696_s13 = sshll.u32 %s798_s0, 4  ;;  %s697_s13 = int_to_ptr.vmem [resolvable:$true] %s696_s13 }
   0xc   :  { %v370_v16 = vor.u32 8388608, %v369_v11  ;;  %v796_v51 = vmov 1326507024   ;;  %s698_s16 = sshll.u32 %s1185_s1, 4  ;;  %s699_s16 = int_to_ptr.hbm [resolvable:$true] %s698_s16 }
   0xd   :  { %v711_v17 = vadd.s32 4294967169, %v37_v12  ;;  %v41_v18 = vor.u32 8388608, %v40_v13  ;;  %v372_v19 = vadd.s32 1, %v717_v14  ;;  %v844_v28 = vadd.s32 1, %v720_v21 }
   0xe   :  { %v840_v24 = vshll.u32 %v370_v16, 8 }
   0xf   :  { %v43_v20 = vadd.s32 1, %v711_v17  ;;  %vm373_vm0 = vcmp.gt.s32.totalorder %v372_v19, 0  ;;  %v838_v22 = vshll.u32 %v41_v18, 8  ;;  %vm532_vm15 = vcmp.gt.s32.totalorder %v844_v28, 0 }
  0x10   :  { %v374_v23 = vsel %vm373_vm0, %v372_v19, 0  ;;  %v852_v31 = vand.u32 65535, %v840_v24  ;;  %v855_v32 = vshrl.u32 %v840_v24, 16 }
  0x11   :  { %vm44_vm1 = vcmp.gt.s32.totalorder %v43_v20, 0  ;;  %v842_v26 = vand.u32 31, %v374_v23  ;;  %v849_v30 = vand.u32 65535, %v838_v22  ;;  %v862_v44 = vshrl.u32 %v374_v23, 5 }
  0x12   :  { %v45_v25 = vsel %vm44_vm1, %v43_v20, 0  ;;  %v83_v13 = vshrl.u32 %v838_v22, 16 }
  0x13   :  { %v47_v27 = vand.u32 31, %v45_v25  ;;  %v846_v29 = vshrl.u32 %v45_v25, 5  ;;  %v865_v45 = vsub.s32 32, %v842_v26  ;;  %v379_v49 = vshll.u32 %v791_v34, %v842_v26 }
  0x14   :  { %v382_v53 = vshll.u32 %v792_v36, %v842_v26  ;;  %v385_v62 = vshll.u32 %v793_v38, %v842_v26  ;;  %vm394_vm6 = vcmp.lt.s32.totalorder %v862_v44, 1  ;;  %vm395_vm7 = vcmp.lt.s32.totalorder %v862_v44, 2 }
  0x15   :  { %v48_v33 = vsub.s32 32, %v47_v27  ;;  %v50_v35 = vshll.u32 %v791_v34, %v47_v27  ;;  %v53_v37 = vshll.u32 %v792_v36, %v47_v27  ;;  %v56_v39 = vshll.u32 %v793_v38, %v47_v27 }
  0x16   :  { %v59_v41 = vshll.u32 %v794_v40, %v47_v27  ;;  %v62_v43 = vshll.u32 %v795_v42, %v47_v27  ;;  %vm65_vm2 = vcmp.lt.s32.totalorder %v846_v29, 1  ;;  %vm68_vm3 = vcmp.lt.s32.totalorder %v846_v29, 4 }
  0x17   :  { %v51_v46 = vshrl.u32 %v792_v36, %v48_v33  ;;  %v54_v47 = vshrl.u32 %v793_v38, %v48_v33  ;;  %v57_v48 = vshrl.u32 %v794_v40, %v48_v33  ;;  %v60_v50 = vshrl.u32 %v795_v42, %v48_v33 }
  0x18   :  { %v63_v52 = vshrl.u32 %v796_v51, %v48_v33  ;;  %v49_v57 = vshrl.u32 %v791_v34, %v48_v33  ;;  %vm67_vm4 = vcmp.lt.s32.totalorder %v846_v29, 3  ;;  %vm66_vm5 = vcmp.lt.s32.totalorder %v846_v29, 2 }
  0x19   :  { %v52_v54 = vor.u32 %v51_v46, %v50_v35  ;;  %v55_v55 = vor.u32 %v54_v47, %v53_v37  ;;  %v58_v56 = vor.u32 %v57_v48, %v56_v39  ;;  %v61_v58 = vor.u32 %v60_v50, %v59_v41 }
  0x1a   :  { %v64_v59 = vor.u32 %v63_v52, %v62_v43  ;;  %v380_v7 = vshrl.u32 %v792_v36, %v865_v45  ;;  %v383_v9 = vshrl.u32 %v793_v38, %v865_v45  ;;  %v386_v17 = vshrl.u32 %v794_v40, %v865_v45 }
  0x1b   :  { %v73_v60 = vsel %vm65_vm2, %v52_v54, %v55_v55  ;;  %v77_v61 = vsel %vm65_vm2, %v55_v55, %v58_v56  ;;  %v74_v63 = vsel %vm68_vm3, %v61_v58, 920167782  ;;  %v70_v10 = vsel %vm68_vm3, %v58_v56, 2102212464 }
  0x1c   :  { %v78_v6 = vsel %vm68_vm3, %v64_v59, 1326507024  ;;  %v75_v11 = vsel %vm67_vm4, %v58_v56, %v74_v63  ;;  %v69_v14 = vsel %vm65_vm2, %v49_v57, %v52_v54  ;;  %v71_v23 = vsel %vm67_vm4, %v55_v55, %v70_v10 }
  0x1d   :  { %v79_v12 = vsel %vm67_vm4, %v61_v58, %v78_v6  ;;  %v76_v15 = vsel %vm66_vm5, %v73_v60, %v75_v11  ;;  %v907_v25 = vor.u32 %v380_v7, %v379_v49  ;;  %v909_v27 = vor.u32 %v383_v9, %v382_v53 }
  0x1e   :  { %v80_v16 = vsel %vm66_vm5, %v77_v61, %v79_v12  ;;  %v106_v20 = vand.u32 65535, %v76_v15  ;;  %v107_v21 = vshrl.u32 %v76_v15, 16  ;;  %v911_v33 = vor.u32 %v386_v17, %v385_v62 }
  0x1f   :  { %v84_v18 = vand.u32 65535, %v80_v16  ;;  %v85_v19 = vshrl.u32 %v80_v16, 16  ;;  %v388_v41 = vshll.u32 %v794_v40, %v842_v26  ;;  %v389_v48 = vshrl.u32 %v795_v42, %v865_v45 }
  0x20   :  { %v108_v43 = vmul.u32 %v106_v20, %v849_v30  ;;  %v109_v46 = vmul.u32 %v107_v21, %v849_v30  ;;  %v110_v47 = vmul.u32 %v106_v20, %v83_v13  ;;  %v391_v53 = vshll.u32 %v795_v42, %v842_v26 }
  0x21   :  { %v86_v35 = vmul.u32 %v84_v18, %v849_v30  ;;  %v87_v37 = vmul.u32 %v85_v19, %v849_v30  ;;  %v88_v39 = vmul.u32 %v84_v18, %v83_v13  ;;  %v89_v49 = vmul.u32 %v85_v19, %v83_v13 }
  0x22   :  { %v111_v55 = vmul.u32 %v107_v21, %v83_v13  ;;  %v112_v56 = vshll.u32 %v109_v46, 16  ;;  %v114_v57 = vshll.u32 %v110_v47, 16  ;;  %v113_v59 = vshrl.u32 %v109_v46, 16 }
  0x23   :  { %v90_v50 = vshll.u32 %v87_v37, 16  ;;  %v92_v52 = vshll.u32 %v88_v39, 16  ;;  %v91_v54 = vshrl.u32 %v87_v37, 16  ;;  %v392_v30 = vshrl.u32 %v796_v51, %v865_v45 }
  0x24   :  { %v797_v60 = vmov 0   ;;  %vm116_vm9 = vc.u32 %v108_v43, %v112_v56  ;;  %v118_v62 = vadd.s32 %v112_v56, %v108_v43  ;;  %v390_v63 = vor.u32 %v389_v48, %v388_v41 }
  0x25   :  { %vm94_vm8 = vc.u32 %v86_v35, %v90_v50  ;;  %v96_v58 = vadd.s32 %v90_v50, %v86_v35  ;;  %v117_v26 = vsel %vm116_vm9, 1, %v797_v60  ;;  %vm396_vm11 = vcmp.lt.s32.totalorder %v862_v44, 3 }
  0x26   :  { %v95_v61 = vsel %vm94_vm8, 1, %v797_v60  ;;  %v119_v9 = vadd.s32 %v117_v26, %v111_v55  ;;  %vm120_vm12 = vc.u32 %v118_v62, %v114_v57  ;;  %v393_v10 = vor.u32 %v392_v30, %v391_v53 }
  0x27   :  { %v97_v6 = vadd.s32 %v95_v61, %v89_v49  ;;  %vm98_vm10 = vc.u32 %v96_v58, %v92_v52  ;;  %v93_v11 = vshrl.u32 %v88_v39, 16  ;;  %v121_v13 = vsel %vm120_vm12, 1, %v797_v60 }
  0x28   :  { %v99_v7 = vsel %vm98_vm10, 1, %v797_v60  ;;  %vm397_vm13 = vcmp.lt.s32.totalorder %v862_v44, 4  ;;  %v115_v15 = vshrl.u32 %v110_v47, 16  ;;  %v123_v16 = vadd.s32 %v121_v13, %v119_v9 }
  0x29   :  { %v101_v12 = vadd.s32 %v99_v7, %v97_v6  ;;  %v402_v17 = vsel %vm394_vm6, %v907_v25, %v909_v27  ;;  %v403_v18 = vsel %vm397_vm13, %v390_v63, 920167782  ;;  %v938_v20 = vadd.s32 %v118_v62, %v114_v57 }
  0x2a   :  { %v404_v21 = vsel %vm396_vm11, %v911_v33, %v403_v18  ;;  %v406_v35 = vsel %vm394_vm6, %v909_v27, %v911_v33  ;;  %v72_v37 = vsel %vm66_vm5, %v69_v14, %v71_v23  ;;  %v124_v39 = vadd.s32 %v123_v16, %v113_v59 }
  0x2b   :  { %v102_v19 = vadd.s32 %v101_v12, %v91_v54  ;;  %v405_v41 = vsel %vm395_vm7, %v402_v17, %v404_v21  ;;  %v407_v43 = vsel %vm397_vm13, %v393_v10, 1326507024  ;;  %v126_v29 = vmul.u32 %v838_v22, %v72_v37 }
  0x2c   :  { %v408_v47 = vsel %vm396_vm11, %v390_v63, %v407_v43  ;;  %v435_v48 = vand.u32 65535, %v405_v41  ;;  %v436_v49 = vshrl.u32 %v405_v41, 16  ;;  %v125_v50 = vadd.s32 %v124_v39, %v115_v15 }
  0x2d   :  { %v953_v46 = vadd.s32 %v102_v19, %v93_v11  ;;  %v409_v52 = vsel %vm395_vm7, %v406_v35, %v408_v47  ;;  %v378_v30 = vshrl.u32 %v791_v34, %v865_v45  ;;  %v533_v10 = vsel %vm532_vm15, %v844_v28, 0 }
  0x2e   :  { %v413_v14 = vand.u32 65535, %v409_v52  ;;  %v414_v23 = vshrl.u32 %v409_v52, 16  ;;  %v129_v53 = vadd.s32 1, %v125_v50  ;;  %v437_v54 = vmul.u32 %v435_v48, %v852_v31 }
  0x2f   :  { %vm128_vm14 = vc.u32 %v953_v46, %v938_v20  ;;  %v438_v55 = vmul.u32 %v436_v49, %v852_v31  ;;  %v439_v56 = vmul.u32 %v435_v48, %v855_v32  ;;  %v440_v61 = vmul.u32 %v436_v49, %v855_v32 }
  0x30   :  { %v415_v57 = vmul.u32 %v413_v14, %v852_v31  ;;  %v416_v58 = vmul.u32 %v414_v23, %v852_v31  ;;  %v417_v59 = vmul.u32 %v413_v14, %v855_v32  ;;  %v130_v22 = vsel %vm128_vm14, %v129_v53, %v125_v50 }
  0x31   :  { %v441_v62 = vshll.u32 %v438_v55, 16  ;;  %v131_v63 = vadd.s32 %v130_v22, %v126_v29  ;;  %v418_v6 = vmul.u32 %v414_v23, %v855_v32  ;;  %v399_v31 = vsel %vm397_vm13, %v911_v33, 2102212464 }
  0x32   :  { %v419_v26 = vshll.u32 %v416_v58, 16  ;;  %v421_v7 = vshll.u32 %v417_v59, 16  ;;  %v443_v9 = vshll.u32 %v439_v56, 16  ;;  %v398_v13 = vsel %vm394_vm6, %v378_v30, %v907_v25 }
  0x33   :  { %vm445_vm0 = vc.u32 %v437_v54, %v441_v62  ;;  %v132_v11 = vadd.s32 536870912, %v131_v63  ;;  %v447_v15 = vadd.s32 %v441_v62, %v437_v54  ;;  %v420_v33 = vshrl.u32 %v416_v58, 16 }
  0x34   :  { %vm423_vm1 = vc.u32 %v415_v57, %v419_v26  ;;  %v425_v12 = vadd.s32 %v419_v26, %v415_v57  ;;  %v446_v45 = vsel %vm445_vm0, 1, %v797_v60  ;;  %v400_v28 = vsel %vm396_vm11, %v909_v27, %v399_v31 }
  0x35   :  { %v424_v32 = vsel %vm423_vm1, 1, %v797_v60  ;;  %v448_v16 = vadd.s32 %v446_v45, %v440_v61  ;;  %v982_v17 = vshrl.u32 %v132_v11, 30  ;;  %v442_v21 = vshrl.u32 %v438_v55, 16 }
  0x36   :  { %v426_v18 = vadd.s32 %v424_v32, %v418_v6  ;;  %vm427_vm2 = vc.u32 %v425_v12, %v421_v7  ;;  %vm449_vm3 = vc.u32 %v447_v15, %v443_v9  ;;  %v422_v25 = vshrl.u32 %v417_v59, 16 }
  0x37   :  { %v428_v19 = vsel %vm427_vm2, 1, %v797_v60  ;;  %v134_v35 = vshll.u32 %v982_v17, 30  ;;  %v450_v39 = vsel %vm449_vm3, 1, %v797_v60  ;;  %v444_v41 = vshrl.u32 %v439_v56, 16 }
  0x38   :  { %v430_v37 = vadd.s32 %v428_v19, %v426_v18  ;;  %v452_v43 = vadd.s32 %v450_v39, %v448_v16  ;;  %v535_v47 = vand.u32 31, %v533_v10  ;;  %v990_v50 = vadd.s32 %v447_v15, %v443_v9 }
  0x39   :  { %v135_v48 = vsub.s32 %v131_v63, %v134_v35  ;;  %v401_v27 = vsel %vm395_vm7, %v398_v13, %v400_v28  ;;  %v521_v23 = vand.u32 2147483647, %v817_v1  ;;  %v127_v7 = vadd.s32 %v938_v20, %v953_v46 }
  0x3a   :  { %v431_v49 = vadd.s32 %v430_v37, %v420_v33  ;;  %v453_v52 = vadd.s32 %v452_v43, %v442_v21  ;;  %v997_v54 = vsub.s32 32, %v535_v47  ;;  %v455_v56 = vmul.u32 %v840_v24, %v401_v27 }
  0x3b   :  { %vm136_vm4 = vcmp.lt.s32.totalorder %v135_v48, 0  ;;  %v137_v29 = vsub.s32 0, %v135_v48  ;;  %v528_v44 = vand.u32 8388607, %v521_v23  ;;  %v541_v59 = vshll.u32 %v792_v36, %v535_v47 }
  0x3c   :  { %v994_v14 = vadd.s32 %v431_v49, %v422_v25  ;;  %v454_v53 = vadd.s32 %v453_v52, %v444_v41  ;;  %v542_v61 = vshrl.u32 %v793_v38, %v997_v54  ;;  %v544_v62 = vshll.u32 %v793_v38, %v535_v47 }
  0x3d   :  { %v138_v55 = vsel %vm136_vm4, %v137_v29, %v135_v48  ;;  %v545_v24 = vshrl.u32 %v794_v40, %v997_v54  ;;  %v550_v6 = vshll.u32 %v795_v42, %v535_v47  ;;  %v551_v26 = vshrl.u32 %v796_v51, %v997_v54 }
  0x3e   :  { %vm457_vm5 = vc.u32 %v994_v14, %v990_v50  ;;  %v139_v57 = vclz %v138_v55  ;;  %v458_v58 = vadd.s32 1, %v454_v53  ;;  %v1015_v31 = vshrl.u32 %v533_v10, 5 }
  0x3f   :  { %v538_v9 = vshll.u32 %v791_v34, %v535_v47  ;;  %v547_v38 = vshll.u32 %v794_v40, %v535_v47  ;;  %v548_v45 = vshrl.u32 %v795_v42, %v997_v54  ;;  %v539_v51 = vshrl.u32 %v792_v36, %v997_v54 }
  0x40   :  { %v712_v22 = vadd.s32 4294967294, %v139_v57  ;;  %v459_v30 = vsel %vm457_vm5, %v458_v58, %v454_v53  ;;  %v1025_v20 = vor.u32 %v542_v61, %v541_v59  ;;  %v1027_v46 = vor.u32 %v545_v24, %v544_v62 }
  0x41   :  { %v460_v63 = vadd.s32 %v459_v30, %v455_v56  ;;  %v552_v10 = vor.u32 %v551_v26, %v550_v6  ;;  %vm553_vm7 = vcmp.lt.s32.totalorder %v1015_v31, 1  ;;  %vm556_vm8 = vcmp.lt.s32.totalorder %v1015_v31, 4 }
  0x42   :  { %vm713_vm6 = vcmp.lt.s32.totalorder %v712_v22, 0  ;;  %v549_v42 = vor.u32 %v548_v45, %v547_v38  ;;  %vm555_vm9 = vcmp.lt.s32.totalorder %v1015_v31, 3  ;;  %v529_v19 = vor.u32 8388608, %v528_v44 }
  0x43   :  { %v142_v11 = vsel %vm713_vm6, 0, %v712_v22  ;;  %v461_v12 = vadd.s32 536870912, %v460_v63  ;;  %vm554_vm10 = vcmp.lt.s32.totalorder %v1015_v31, 2  ;;  %v1034_v35 = vor.u32 %v539_v51, %v538_v9 }
  0x44   :  { %v143_v13 = vsub.s32 32, %v142_v11  ;;  %v144_v32 = vshll.u32 %v135_v48, %v142_v11  ;;  %v147_v15 = vsub.s32 4294967266, %v142_v11  ;;  %v565_v25 = vsel %vm553_vm7, %v1025_v20, %v1027_v46 }
  0x45   :  { %v1023_v16 = vshrl.u32 %v461_v12, 30  ;;  %v566_v37 = vsel %vm556_vm8, %v552_v10, 1326507024  ;;  %v562_v48 = vsel %vm556_vm8, %v549_v42, 920167782  ;;  %v1048_v52 = vshll.u32 %v529_v19, 8 }
  0x46   :  { %v145_v33 = vshrl.u32 %v127_v7, %v143_v13  ;;  %v148_v18 = vadd.s32 127, %v147_v15  ;;  %v567_v43 = vsel %vm555_vm9, %v549_v42, %v566_v37  ;;  %v561_v53 = vsel %vm553_vm7, %v1034_v35, %v1025_v20 }
  0x47   :  { %v463_v40 = vshll.u32 %v1023_v16, 30  ;;  %v568_v49 = vsel %vm554_vm10, %v565_v25, %v567_v43  ;;  %v563_v58 = vsel %vm555_vm9, %v1027_v46, %v562_v48  ;;  %v570_v44 = vand.u32 65535, %v1048_v52 }
  0x48   :  { %v146_v28 = vor.u32 %v145_v33, %v144_v32  ;;  %v149_v36 = vshll.u32 %v148_v18, 23  ;;  %v573_v55 = vshrl.u32 %v568_v49, 16  ;;  %v572_v59 = vand.u32 65535, %v568_v49 }
  0x49   :  { %v464_v21 = vsub.s32 %v460_v63, %v463_v40  ;;  %v571_v30 = vshrl.u32 %v1048_v52, 16  ;;  %v564_v62 = vsel %vm554_vm10, %v561_v53, %v563_v58  ;;  %vm35_vm12 = vcmp.lt.s32.totalorder %v825_v4, 0 }
  0x4a   :  { %v150_v39 = vor.u32 4788187, %v149_v36  ;;  %v153_v41 = vcvt.s32.f32 %v146_v28  ;;  %v575_v63 = vmul.u32 %v573_v55, %v570_v44  ;;  %v574_v6 = vmul.u32 %v572_v59, %v570_v44 }
  0x4b   :  { %vm465_vm11 = vcmp.lt.s32.totalorder %v464_v21, 0  ;;  %v466_v47 = vsub.s32 0, %v464_v21  ;;  %v576_v7 = vmul.u32 %v572_v59, %v571_v30  ;;  %v595_v9 = vshrl.u32 %v564_v62, 16 }
  0x4c   :  { %v151_v27 = vand.u32 2147483647, %v150_v39  ;;  %v578_v26 = vshll.u32 %v575_v63, 16  ;;  %vm1064_vm14 = vcmp.le.f32.partialorder %v33_v8, 0.7853982  ;;  %v456_v45 = vadd.s32 %v990_v50, %v994_v14 }
  0x4d   :  { %v467_v29 = vsel %vm465_vm11, %v466_v47, %v464_v21  ;;  %v577_v15 = vmul.u32 %v573_v55, %v571_v30  ;;  %v594_v51 = vand.u32 65535, %v564_v62  ;;  %v580_v8 = vshll.u32 %v576_v7, 16 }
  0x4e   :  { %v154_v56 = vmul.f32 %v153_v41, %v151_v27  ;;  %v468_v57 = vclz %v467_v29  ;;  %vm582_vm15 = vc.u32 %v574_v6, %v578_v26  ;;  %v597_v33 = vmul.u32 %v595_v9, %v570_v44 }
  0x4f   :  { %v583_v18 = vsel %vm582_vm15, 1, %v797_v60  ;;  %v584_v36 = vadd.s32 %v578_v26, %v574_v6  ;;  %v596_v19 = vmul.u32 %v594_v51, %v570_v44  ;;  %v598_v25 = vmul.u32 %v594_v51, %v571_v30 }
  0x50   :  { %v718_v22 = vadd.s32 4294967294, %v468_v57  ;;  %v155_v61 = vxor.u32 2147483648, %v154_v56  ;;  %v585_v14 = vadd.s32 %v583_v18, %v577_v15  ;;  %v600_v37 = vshll.u32 %v597_v33, 16 }
  0x51   :  { %vm586_vm0 = vc.u32 %v584_v36, %v580_v8  ;;  %v579_v39 = vshrl.u32 %v575_v63, 16  ;;  %v599_v43 = vmul.u32 %v595_v9, %v571_v30  ;;  %v602_v47 = vshll.u32 %v598_v25, 16 }
  0x52   :  { %vm719_vm13 = vcmp.lt.s32.totalorder %v718_v22, 0  ;;  %v156_v12 = vsel %vm35_vm12, %v155_v61, %v154_v56  ;;  %v587_v41 = vsel %vm586_vm0, 1, %v797_v60  ;;  %vm604_vm1 = vc.u32 %v596_v19, %v600_v37 }
  0x53   :  { %v471_v24 = vsel %vm719_vm13, 0, %v718_v22  ;;  %v1075_v10 = vsel %vm1064_vm14, %v825_v4, %v156_v12  ;;  %v589_v27 = vadd.s32 %v587_v41, %v585_v14  ;;  %v606_v29 = vadd.s32 %v600_v37, %v596_v19 }
  0x54   :  { %v476_v38 = vsub.s32 4294967266, %v471_v24  ;;  %v472_v13 = vsub.s32 32, %v471_v24  ;;  %v473_v40 = vshll.u32 %v464_v21, %v471_v24  ;;  %v161_v50 = vmul.f32 %v1075_v10, %v1075_v10 }
  0x55   :  { %v537_v53 = vshrl.u32 %v791_v34, %v997_v54  ;;  %v558_v55 = vsel %vm556_vm8, %v1027_v46, 2102212464  ;;  %v581_v56 = vshrl.u32 %v576_v7, 16  ;;  %v605_v57 = vsel %vm604_vm1, 1, %v797_v60 }
  0x56   :  { %v477_v32 = vadd.s32 127, %v476_v38  ;;  %v474_v42 = vshrl.u32 %v456_v45, %v472_v13  ;;  %v169_v21 = vmul.f32 -0.00019511016, %v161_v50  ;;  %v590_v58 = vadd.s32 %v589_v27, %v579_v39 }
  0x57   :  { %v601_v44 = vshrl.u32 %v597_v33, 16  ;;  %v607_v59 = vadd.s32 %v605_v57, %v599_v43  ;;  %vm608_vm2 = vc.u32 %v606_v29, %v602_v47  ;;  %v162_v62 = vmul.f32 -0.001358992, %v161_v50 }
  0x58   :  { %v478_v28 = vshll.u32 %v477_v32, 23  ;;  %v475_v48 = vor.u32 %v474_v42, %v473_v40  ;;  %v609_v61 = vsel %vm608_vm2, 1, %v797_v60  ;;  %v170_v63 = vadd.f32 0.008332121, %v169_v21 }
  0x59   :  { %v611_v24 = vadd.s32 %v609_v61, %v607_v59  ;;  %v557_v34 = vsel %vm553_vm7, %v537_v53, %v1034_v35  ;;  %v559_v54 = vsel %vm555_vm9, %v1025_v20, %v558_v55  ;;  %v603_v46 = vshrl.u32 %v598_v25, 16 }
  0x5a   :  { %v479_v49 = vor.u32 4788187, %v478_v28  ;;  %v482_v30 = vcvt.s32.f32 %v475_v48  ;;  %v591_v6 = vadd.s32 %v590_v58, %v581_v56  ;;  %v610_v26 = vadd.s32 %v606_v29, %v602_v47 }
  0x5b   :  { %v612_v7 = vadd.s32 %v611_v24, %v601_v44  ;;  %v163_v12 = vadd.f32 0.041655596, %v162_v62  ;;  %v171_v38 = vmul.f32 %v170_v63, %v161_v50  ;;  %v560_v60 = vsel %vm554_vm10, %v557_v34, %v559_v54 }
  0x5c   :  { %v480_v22 = vand.u32 2147483647, %v479_v49  ;;  %vm616_vm3 = vc.u32 %v591_v6, %v610_v26  ;;  %v614_v32 = vmul.u32 %v1048_v52, %v560_v60  ;;  %vm364_vm4 = vcmp.lt.s32.totalorder %v815_v0, 0 }
  0x5d   :  { %v613_v45 = vadd.s32 %v612_v7, %v603_v46  ;;  %v164_v15 = vmul.f32 %v163_v12, %v161_v50  ;;  %v172_v51 = vadd.f32 -0.16666654, %v171_v38  ;;  %v157_v8 = vsub.s32 4, %v982_v17 }
  0x5e   :  { %v483_v9 = vmul.f32 %v482_v30, %v480_v22  ;;  %vm1101_vm5 = vcmp.le.f32.partialorder %v362_v5, 0.7853982  ;;  %v615_v44 = vadd.s32 %v610_v26, %v591_v6  ;;  %vm176_vm11 = vweird.f32 %v825_v4 }
  0x5f   :  { %v617_v35 = vadd.s32 1, %v613_v45  ;;  %v165_v40 = vadd.f32 -0.4999988, %v164_v15  ;;  %v173_v52 = vmul.f32 %v172_v51, %v161_v50  ;;  %v158_v36 = vsel %vm35_vm12, %v157_v8, %v982_v17 }
  0x60   :  { %v484_v13 = vxor.u32 2147483648, %v483_v9  ;;  %v160_v37 = vsel %vm1064_vm14, 0, %v158_v36  ;;  %v486_v63 = vsub.s32 4, %v1023_v16  ;;  %vm523_vm12 = vcmp.lt.s32.totalorder %v817_v1, 0 }
  0x61   :  { %v618_v20 = vsel %vm616_vm3, %v617_v35, %v613_v45  ;;  %v166_v14 = vmul.f32 %v165_v40, %v161_v50  ;;  %v174_v19 = vadd.f32 1.0, %v173_v52  ;;  %v332_v48 = vand.u32 3, %v160_v37 }
  0x62   :  { %v485_v31 = vsel %vm364_vm4, %v484_v13, %v483_v9  ;;  %v619_v18 = vadd.s32 %v618_v20, %v614_v32  ;;  %v177_v26 = vadd.s32 3, %v160_v37  ;;  %v487_v12 = vsel %vm364_vm4, %v486_v63, %v1023_v16 }
  0x63   :  { %v1110_v28 = vsel %vm1101_vm5, %v815_v0, %v485_v31  ;;  %v1122_v41 = vadd.f32 1.0, %v166_v14  ;;  %v1125_v43 = vmul.f32 %v174_v19, %v1075_v10  ;;  %vm334_vm7 = vcmp.eq.s32.totalorder %v332_v48, 0 }
  0x64   :  { %v620_v42 = vadd.s32 536870912, %v619_v18  ;;  %v490_v25 = vmul.f32 %v1110_v28, %v1110_v28  ;;  %vm337_vm8 = vcmp.eq.s32.totalorder %v332_v48, 2  ;;  %vm333_vm9 = vcmp.lt.s32.totalorder %v332_v48, 2 }
  0x65   :  { %v181_v50 = vxor.u32 2147483648, %v1125_v43  ;;  %v184_v27 = vxor.u32 2147483648, %v1122_v41  ;;  %v489_v35 = vsel %vm1101_vm5, 0, %v487_v12  ;;  %v178_v51 = vand.u32 3, %v177_v26 }
  0x66   :  { %v1115_v5 = vshrl.u32 %v620_v42, 30  ;;  %v498_v17 = vmul.f32 -0.00019511016, %v490_v25  ;;  %v491_v21 = vmul.f32 -0.001358992, %v490_v25  ;;  %v506_v40 = vadd.s32 3, %v489_v35 }
  0x67   :  { %v336_v10 = vsel %vm334_vm7, %v1122_v41, %v181_v50  ;;  %v339_v56 = vsel %vm337_vm8, %v184_v27, %v1125_v43  ;;  %vm1150_vm13 = vcmp.le.f32.partialorder %v521_v23, 0.7853982  ;;  %vm180_vm14 = vcmp.eq.s32.totalorder %v178_v51, 0 }
  0x68   :  { %v622_v39 = vshll.u32 %v1115_v5, 30  ;;  %v499_v11 = vadd.f32 0.008332121, %v498_v17  ;;  %v492_v57 = vadd.f32 0.041655596, %v491_v21  ;;  %v340_v22 = vsel %vm333_vm9, %v336_v10, %v339_v56 }
  0x69   :  { %v1135_v7 = vsel %vm176_vm11, nan, %v340_v22  ;;  %v645_v16 = vsub.s32 4, %v1115_v5  ;;  %vm183_vm15 = vcmp.eq.s32.totalorder %v178_v51, 2  ;;  %v507_v19 = vand.u32 3, %v506_v40 }
  0x6a   :  { %v623_v47 = vsub.s32 %v619_v18, %v622_v39  ;;  %v500_v58 = vmul.f32 %v499_v11, %v490_v25  ;;  %v493_v24 = vmul.f32 %v492_v57, %v490_v25  ;;  %v342_v60 = vmul.f32 %v1135_v7, %v1135_v7 }
  0x6b   :  { %vm179_vm0 = vcmp.lt.s32.totalorder %v178_v51, 2  ;;  %v182_v39 = vsel %vm180_vm14, %v1122_v41, %v181_v50  ;;  %vm509_vm1 = vcmp.eq.s32.totalorder %v507_v19, 0  ;;  %vm512_vm2 = vcmp.eq.s32.totalorder %v507_v19, 2 }
  0x6c   :  { %vm624_vm6 = vcmp.lt.s32.totalorder %v623_v47, 0  ;;  %v625_v49 = vsub.s32 0, %v623_v47  ;;  %v501_v34 = vadd.f32 -0.16666654, %v500_v58  ;;  %v494_v38 = vadd.f32 -0.4999988, %v493_v24 }
  0x6d   :  { %v1144_v8 = vsub.f32 2.0, %v342_v60  ;;  %vm508_vm3 = vcmp.lt.s32.totalorder %v507_v19, 2  ;;  %vm505_vm4 = vweird.f32 %v815_v0  ;;  %v360_v63 = vmul.f32 %v821_v3, %v821_v3 }
  0x6e   :  { %v626_v29 = vsel %vm624_vm6, %v625_v49, %v623_v47  ;;  %v502_v45 = vmul.f32 %v501_v34, %v490_v25  ;;  %v495_v20 = vmul.f32 %v494_v38, %v490_v25  ;;  %v646_v25 = vsel %vm523_vm12, %v645_v16, %v1115_v5 }
  0x6f   :  { %v627_v53 = vclz %v626_v29  ;;  %734 = vrcp.f32 %v1144_v8  ;;  %v648_v49 = vsel %vm1150_vm13, 0, %v646_v25  ;;  %v519_v4 = vmul.f32 %v819_v2, %v819_v2 }
  0x70   :  { %v503_v31 = vadd.f32 1.0, %v502_v45  ;;  %v496_v42 = vadd.f32 1.0, %v495_v20  ;;  %vm349_vm8 = vweird.f32 %v1144_v8  ;;  %v355_v3 = vand.u32 2147483648, %v1144_v8 }
  0x71   :  { %v721_v55 = vadd.s32 4294967294, %v627_v53  ;;  %v353_v2 = vand.u32 2147483647, %v1144_v8 }
  0x72   :  { %v504_v36 = vmul.f32 %v503_v31, %v1110_v28  ;;  %v513_v48 = vxor.u32 2147483648, %v496_v42  ;;  %v356_v20 = vor.u32 1.1754944e-38, %v355_v3 }
  0x73   :  { %vm722_vm10 = vcmp.lt.s32.totalorder %v721_v55, 0 }
  0x74   :  { %v630_v59 = vsel %vm722_vm10, 0, %v721_v55  ;;  %v510_v17 = vxor.u32 2147483648, %v504_v36  ;;  %v665_v55 = vadd.s32 3, %v648_v49  ;;  %v514_v56 = vsel %vm512_vm2, %v513_v48, %v504_v36 }
  0x75   :  { %v631_v30 = vsub.s32 32, %v630_v59  ;;  %v632_v61 = vshll.u32 %v623_v47, %v630_v59  ;;  %v635_v62 = vsub.s32 4294967266, %v630_v59  ;;  %v185_v47 = vsel %vm183_vm15, %v184_v27, %v1125_v43  ;;  %v735_v5 = vpop.eup %734 }
  0x76   :  { %v186_v53 = vsel %vm179_vm0, %v182_v39, %v185_v47  ;;  %v511_v10 = vsel %vm509_vm1, %v496_v42, %v510_v17  ;;  %v345_v43 = vmul.f32 %v735_v5, %v1144_v8  ;;  %v666_v59 = vand.u32 3, %v665_v55 }
  0x77   :  { %v633_v54 = vshrl.u32 %v615_v44, %v631_v30  ;;  %v636_v46 = vadd.s32 127, %v635_v62  ;;  %v187_v27 = vsel %vm176_vm11, nan, %v186_v53  ;;  %v515_v44 = vsel %vm508_vm3, %v511_v10, %v514_v56 }
  0x78   :  { %v359_v62 = vsub.f32 0.0, %v187_v27  ;;  %v516_v24 = vsel %vm505_vm4, nan, %v515_v44  ;;  %vm671_vm5 = vcmp.eq.s32.totalorder %v666_v59, 2  ;;  %vm668_vm6 = vcmp.eq.s32.totalorder %v666_v59, 0 }
  0x79   :  { %v634_v9 = vor.u32 %v633_v54, %v632_v61  ;;  %v637_v6 = vshll.u32 %v636_v46, 23  ;;  %v346_v61 = vsub.f32 1.0, %v345_v43  ;;  %v517_v26 = vmul.f32 19.62, %v516_v24 }
  0x7a   :  { %v361_v0 = vmul.f32 %v360_v63, %v359_v62  ;;  %vm667_vm7 = vcmp.lt.s32.totalorder %v666_v59, 2  ;;  %vm350_vm9 = vweird.f32 %v735_v5  ;;  %vm664_vm10 = vweird.f32 %v817_v1 }
  0x7b   :  { %v638_v13 = vor.u32 4788187, %v637_v6  ;;  %v641_v32 = vcvt.s32.f32 %v634_v9  ;;  %v347_v6 = vmul.f32 %v735_v5, %v346_v61  ;;  %v520_v60 = vmul.f32 %v519_v4, %v187_v27  ;;  %vm351_vm11 = vmor %vm349_vm8, %vm350_vm9 }
  0x7d   :  { %v639_v15 = vand.u32 2147483647, %v638_v13  ;;  %v348_v13 = vadd.f32 %v735_v5, %v347_v6 }
  0x7f   :  { %v642_v18 = vmul.f32 %v641_v32, %v639_v15  ;;  %v518_v32 = vsub.f32 %v361_v0, %v517_v26  ;;  %v352_v31 = vsel %vm351_vm11, %v735_v5, %v348_v13 }
  0x81   :  { %v643_v33 = vxor.u32 2147483648, %v642_v18  ;;  %v682_v40 = vmul.f32 %v518_v32, %v1135_v7 }
  0x83   :  { %v644_v14 = vsel %vm523_vm12, %v643_v33, %v642_v18  ;;  %vm354_vm12 = vcmp.eq.f32.partialorder %v353_v2, 8.507059e+37 }
  0x84   :  { %v647_v37 = vsel %vm1150_vm13, %v817_v1, %v644_v14  ;;  %v357_v52 = vsel %vm354_vm12, %v356_v20, %v352_v31 }
  0x85   :  { %v649_v23 = vmul.f32 %v647_v37, %v647_v37 }
  0x87   :  { %v650_v28 = vmul.f32 -0.001358992, %v649_v23  ;;  %v657_v21 = vmul.f32 -0.00019511016, %v649_v23 }
  0x89   :  { %v651_v29 = vadd.f32 0.041655596, %v650_v28  ;;  %v658_v11 = vadd.f32 0.008332121, %v657_v21 }
  0x8b   :  { %v652_v41 = vmul.f32 %v651_v29, %v649_v23  ;;  %v659_v50 = vmul.f32 %v658_v11, %v649_v23 }
  0x8d   :  { %v653_v57 = vadd.f32 -0.4999988, %v652_v41  ;;  %v660_v58 = vadd.f32 -0.16666654, %v659_v50 }
  0x8f   :  { %v654_v22 = vmul.f32 %v653_v57, %v649_v23  ;;  %v661_v30 = vmul.f32 %v660_v58, %v649_v23 }
  0x91   :  { %v655_v34 = vadd.f32 1.0, %v654_v22  ;;  %v662_v54 = vadd.f32 1.0, %v661_v30 }
  0x93   :  { %v663_v46 = vmul.f32 %v662_v54, %v647_v37  ;;  %v672_v9 = vxor.u32 2147483648, %v655_v34 }
  0x95   :  { %v669_v12 = vxor.u32 2147483648, %v663_v46  ;;  %v673_v38 = vsel %vm671_vm5, %v672_v9, %v663_v46 }
  0x97   :  { %v670_v45 = vsel %vm668_vm6, %v655_v34, %v669_v12 }
  0x98   :  { %v674_v35 = vsel %vm667_vm7, %v670_v45, %v673_v38 }
  0x99   :  { %v675_v15 = vsel %vm664_vm10, nan, %v674_v35 }
  0x9a   :  { %v676_v51 = vmul.f32 9.81, %v675_v15 }
  0x9c   :  { %v677_v18 = vsub.f32 %v520_v60, %v676_v51 }
  0x9e   :  { %v678_v1 = vmul.f32 %v677_v18, %v1135_v7  ;;  %v681_v16 = vmul.f32 2.0, %v677_v18 }
  0xa0   :  { %v679_v33 = vsub.f32 %v518_v32, %v678_v1  ;;  %v683_v42 = vsub.f32 %v681_v16, %v682_v40 }
  0xa2   :  { %v680_v8 = vmul.f32 %v679_v33, %v357_v52  ;;  %v684_v36 = vmul.f32 %v683_v42, %v357_v52 }
  0xa4   :  { %689 = vst [vmem:[#allocation5 + $0x10] sm:$0xff] %v680_v8 }
  0xa5   :  { %691 = vst [vmem:[#allocation5 + $0x18] sm:$0xff] %v684_v36 }
  0xa6   :  { %704 = dma.vmem_to_hbm [thread:$0]  %s697_s13, 512, %s699_s16, [#allocation4], %s789_s11, %s789_s11, %s790_s12  }
  0xa7   :  { %786 = dma.done.wait [#allocation4], 512  }
  0xa8   :  { %787 = vsyncadd [#allocation4], 4294966784 }
  0xa9   :  { %709 = vsyncpa [#allocation3], 1 }
  0xaa   :  { %710 = vsyncpa [#allocation4], 1 }

</bundles_post_ra>
